<compile_context>
chip_gen: v7x
topology: tpu7x:2x2x1
jax: 0.10.0
libtpu: 0.0.40
codegen_flags: <defaults>
</compile_context>

<pallas_src>
import functools

import jax
import jax.numpy as jnp
from jax import lax
from jax.experimental import pallas as pl
from jax.experimental.pallas import tpu as pltpu


def _shortcut_a_kernel(x_ref, o_ref, t_ref, *, c, h, w, pad, ho, wo):
    """Option-'A' ResNet shortcut: x[:, :, ::2, ::2] + channel zero padding.

    x_ref : (bn, C, H*W)        lane-dense NCHW input block (spatial on lanes)
    o_ref : (bn, C_out, Ho*Wo)  lane-dense output block, C_out = C + 2*pad
    t_ref : (H, W, C)           per-sample VMEM scratch (spatial on sublanes,
                                channels on lanes)
    """
    bn = x_ref.shape[0]
    how = ho * wo

    # Hoist the zero-band splat out of the per-sample loop.
    z = jnp.zeros((pad, how), dtype=o_ref.dtype) if pad > 0 else None

    def body(b, carry):
        # (C, H*W) sample: channels on sublanes, flattened spatial on lanes.
        xt = x_ref[b]
        # One XLU transpose per sample puts the spatial axis on sublanes and
        # channels on lanes; the trailing reshape only splits the sublane
        # axis (H*W -> H, W), which is layout-free for W % 8 == 0.
        t_ref[...] = xt.T.reshape(h, w, c)
        # Both stride-2 selects are now cheap ref reads: a block-index stride
        # on the leading (untiled) H axis and a hardware strided sublane read
        # on the W axis.
        sub = t_ref[pl.ds(0, ho, 2), pl.ds(0, wo, 2), :]      # (Ho, Wo, C)
        # Merge (Ho, Wo) on sublanes (free for Wo % 8 == 0) and transpose
        # back: the result is already the lane-dense (C, Ho*Wo) output layout.
        y = sub.reshape(how, c).T                             # (C, Ho*Wo)

        if pad > 0:
            o_ref[b, :pad, :] = z
            o_ref[b, pad + c:, :] = z
        o_ref[b, pad:pad + c, :] = y
        return carry

    lax.fori_loop(0, bn, body, 0)


def _round_up(x, m):
    return (x + m - 1) // m * m


def lambda_layer_shortcut_a(x_nchw, planes, *, target_block_bytes=2 * 1024 * 1024):
    """LambdaLayer(lambda x: F.pad(x[:, :, ::2, ::2], (0,0,0,0,p//4,p//4)))."""
    n, c, h, w = x_nchw.shape
    pad = planes // 4
    ho, wo = (h + 1) // 2, (w + 1) // 2
    c_out = c + 2 * pad
    dtype = x_nchw.dtype
    itemsize = jnp.dtype(dtype).itemsize

    # Batch-group size: largest bn dividing N with an input block near
    # target_block_bytes (1-2 MiB keeps this mem-bound kernel near the HBM
    # roofline; the double-buffered footprint stays a few MiB).
    per_sample = c * h * w * itemsize
    bn = max(1, min(n, target_block_bytes // max(1, per_sample)))
    while n % bn:
        bn -= 1
    grid = (n // bn,)

    # Free, contiguous reshapes only (no wrapper transposes / extra HBM pass).
    xf = x_nchw.reshape(n, c, h * w)

    # Trim the scoped-VMEM request to the actual (tile-padded) footprint:
    # two buffers each for in/out blocks + the single scratch + margin.
    in_vmem = bn * _round_up(c, 8) * _round_up(h * w, 128) * itemsize
    out_vmem = bn * _round_up(c_out, 8) * _round_up(ho * wo, 128) * itemsize
    scr_vmem = h * _round_up(w, 8) * _round_up(c, 128) * itemsize
    vmem_limit = min(32 * 1024 * 1024,
                     2 * (in_vmem + out_vmem) + scr_vmem + 4 * 1024 * 1024)

    kernel = functools.partial(_shortcut_a_kernel,
                               c=c, h=h, w=w, pad=pad, ho=ho, wo=wo)

    out_flat = pl.pallas_call(
        kernel,
        out_shape=jax.ShapeDtypeStruct((n, c_out, ho * wo), dtype),
        grid=grid,
        # Only the batch axis is partitioned; the last two dims of every
        # block equal the full array dims, so the (8,128) constraint holds
        # for any C/H/W.
        in_specs=[pl.BlockSpec((bn, c, h * w), lambda i: (i, 0, 0))],
        out_specs=pl.BlockSpec((bn, c_out, ho * wo), lambda i: (i, 0, 0)),
        scratch_shapes=[pltpu.VMEM((h, w, c), dtype)],
        compiler_params=pltpu.CompilerParams(
            dimension_semantics=("parallel",),
            vmem_limit_bytes=int(vmem_limit),
        ),
    )(xf)

    # Free reshape back to NCHW (contiguous trailing-dim split).
    return out_flat.reshape(n, c_out, ho, wo)


def _reference(x_nchw, planes):
    pad = planes // 4
    y = x_nchw[:, :, ::2, ::2]
    return jnp.pad(y, ((0, 0), (pad, pad), (0, 0), (0, 0)))


if __name__ == "__main__":
    key = jax.random.PRNGKey(0)
    # LambdaLayer has no parameters; only an input is needed (NCHW).
    x = jax.random.normal(key, (2, 4, 16, 16), dtype=jnp.float32)
    planes = 8  # ResNet block width => channel pad of planes//4 on each side

    out = lambda_layer_shortcut_a(x, planes)
    out = jax.block_until_ready(out)

    expected = _reference(x, planes)
    assert out.shape == expected.shape == (2, 8, 8, 8)
    assert bool(jnp.array_equal(out, expected))
    print("KERNEL_OK")
</pallas_src>

<mosaic_0001>
module attributes {stable_mosaic.version = 11 : i64} {
  func.func @_shortcut_a_kernel(%arg0: i32, %arg1: memref<2x4x256xf32, #tpu.memory_space<vmem>>, %arg2: memref<2x8x64xf32, #tpu.memory_space<vmem>>, %arg3: memref<16x16x4xf32, #tpu.memory_space<vmem>>) attributes {dimension_semantics = [#tpu.dimension_semantics<parallel>], iteration_bounds = array<i64: 1>, scalar_prefetch = 0 : i64, scratch_operands = 1 : i64, tpu.core_type = #tpu.core_type<tc>, window_params = [{transform_indices = @transform_0, window_bounds = array<i64: 2, 4, 256>}, {transform_indices = @transform_1, window_bounds = array<i64: 2, 8, 64>}]} {
    %cst = arith.constant 0.000000e+00 : f32
    %0 = vector.broadcast %cst : f32 to vector<2x64xf32>
    %c0_i32 = arith.constant 0 : i32
    %c2_i32 = arith.constant 2 : i32
    %1 = arith.addi %c0_i32, %c2_i32 : i32
    %c1_i32 = arith.constant 1 : i32
    scf.for %arg4 = %c0_i32 to %1 step %c1_i32  : i32 {
      %2 = arith.index_cast %arg4 : i32 to index
      %c0 = arith.constant 0 : index
      %c0_1 = arith.constant 0 : index
      %3 = vector.load %arg1[%2, %c0, %c0_1] : memref<2x4x256xf32, #tpu.memory_space<vmem>>, vector<1x4x256xf32>
      %4 = vector.shape_cast %3 : vector<1x4x256xf32> to vector<4x256xf32>
      %5 = tpu.transpose %4, [1, 0] : vector<4x256xf32> -> vector<256x4xf32>
      %6 = vector.shape_cast %5 : vector<256x4xf32> to vector<16x16x4xf32>
      %c0_2 = arith.constant 0 : index
      %c0_3 = arith.constant 0 : index
      %c0_4 = arith.constant 0 : index
      %7 = vector.load %arg3[%c0_2, %c0_3, %c0_4] : memref<16x16x4xf32, #tpu.memory_space<vmem>>, vector<16x16x4xf32>
      tpu.vector_store %arg3[%c0_2, %c0_3, %c0_4], %6 {strides = array<i32>} : memref<16x16x4xf32, #tpu.memory_space<vmem>>, vector<16x16x4xf32>,
      %c0_5 = arith.constant 0 : index
      %c0_6 = arith.constant 0 : index
      %c0_7 = arith.constant 0 : index
      %8 = tpu.strided_load %arg3[%c0_5, %c0_6, %c0_7] {strides = array<i32: 2, 2, 1>} : memref<16x16x4xf32, #tpu.memory_space<vmem>>, vector<8x8x4xf32>
      %9 = vector.shape_cast %8 : vector<8x8x4xf32> to vector<64x4xf32>
      %10 = tpu.transpose %9, [1, 0] : vector<64x4xf32> -> vector<4x64xf32>
      %11 = arith.index_cast %arg4 : i32 to index
      %c0_8 = arith.constant 0 : index
      %c0_9 = arith.constant 0 : index
      %12 = vector.load %arg2[%11, %c0_8, %c0_9] : memref<2x8x64xf32, #tpu.memory_space<vmem>>, vector<1x2x64xf32>
      %13 = vector.shape_cast %12 : vector<1x2x64xf32> to vector<2x64xf32>
      %14 = vector.shape_cast %0 : vector<2x64xf32> to vector<1x2x64xf32>
      tpu.vector_store %arg2[%11, %c0_8, %c0_9], %14 {strides = array<i32>} : memref<2x8x64xf32, #tpu.memory_space<vmem>>, vector<1x2x64xf32>,
      %15 = arith.index_cast %arg4 : i32 to index
      %c6 = arith.constant 6 : index
      %c0_10 = arith.constant 0 : index
      %16 = vector.load %arg2[%15, %c6, %c0_10] : memref<2x8x64xf32, #tpu.memory_space<vmem>>, vector<1x2x64xf32>
      %17 = vector.shape_cast %16 : vector<1x2x64xf32> to vector<2x64xf32>
      %18 = vector.shape_cast %0 : vector<2x64xf32> to vector<1x2x64xf32>
      tpu.vector_store %arg2[%15, %c6, %c0_10], %18 {strides = array<i32>} : memref<2x8x64xf32, #tpu.memory_space<vmem>>, vector<1x2x64xf32>,
      %19 = arith.index_cast %arg4 : i32 to index
      %c2 = arith.constant 2 : index
      %c0_11 = arith.constant 0 : index
      %20 = vector.load %arg2[%19, %c2, %c0_11] : memref<2x8x64xf32, #tpu.memory_space<vmem>>, vector<1x4x64xf32>
      %21 = vector.shape_cast %20 : vector<1x4x64xf32> to vector<4x64xf32>
      %22 = vector.shape_cast %10 : vector<4x64xf32> to vector<1x4x64xf32>
      tpu.vector_store %arg2[%19, %c2, %c0_11], %22 {strides = array<i32>} : memref<2x8x64xf32, #tpu.memory_space<vmem>>, vector<1x4x64xf32>,
    }
    %c2_i32_0 = arith.constant 2 : i32
    return
  }
  func.func @transform_0(%arg0: i32) -> (i32, i32, i32) {
    %c0_i32 = arith.constant 0 : i32
    %c0_i32_0 = arith.constant 0 : i32
    %c0_i32_1 = arith.constant 0 : i32
    return %arg0, %c0_i32, %c0_i32_0 : i32, i32, i32
  }
  func.func @transform_1(%arg0: i32) -> (i32, i32, i32) {
    %c0_i32 = arith.constant 0 : i32
    %c0_i32_0 = arith.constant 0 : i32
    %c0_i32_1 = arith.constant 0 : i32
    return %arg0, %c0_i32, %c0_i32_0 : i32, i32, i32
  }
}

</mosaic_0001>

<bundles_post_ra>
// kernel: tpu_custom_call.1
= control target key start
LH: loop header
LB: loop body
LE: loop exit
PB: predicated region body
PF: predicated region fallthrough
CT: control target
= control target key end

     0   :  { %6 = vsyncpa [#allocation4], 0  ;;  %s361_s0 = inlined_call_operand.hbm [shape: f32[2,4,256], index: 0, kind: input, shape index: {}]   ;;  %s362_s1 = inlined_call_operand.hbm [shape: f32[2,8,64], index: 1, kind: output, shape index: {}]  }
   0x1   :  { %7 = vsyncpa [#allocation5], 0  ;;  %s286_s6 = smov [#allocation3]   ;;  %s230_s10 = scalar_lea.hbm %s361_s0, 256 }
   0x2   :  { %s13_s7 = sshll.u32 %s286_s6, 4  ;;  %p231_p0 = scmp.ne.s32.totalorder %s361_s0, %s230_s10  ;;  %s14_s7 = int_to_ptr.vmem [resolvable:$true] %s13_s7 }
   0x3   :  { %p234_p1 = scmp.lt.u32.totalorder %s230_s10, %s361_s0 }
   0x5   :  { %p236_p2 = pnand %p234_p1, %p231_p0 }
   0x7   :  { %239 = shalt.err (!%p236_p2)
}
   0x8   :  { %s240_s15 = scalar_lea.vmem %s14_s7, 256  ;;  %p245_p4 = scmp.lt.s32.totalorder %s14_s7, %s14_s7 }
   0x9   :  { %p241_p3 = scmp.ne.s32.totalorder %s14_s7, %s240_s15  ;;  %p246_p5 = scmp.lt.s32.totalorder %s240_s15, %s240_s15 }
   0xb   :  { %p247_p6 = por %p246_p5, %p245_p4 }
   0xd   :  { %p248_p7 = pnand %p247_p6, %p241_p3 }
   0xf   :  { %251 = shalt.err (!%p248_p7)
}
  0x10   :  { %s287_s16 = smov 128   ;;  %s288_s17 = smov 8  }
  0x11   :  { %19 = dma.hbm_to_vmem [thread:$0]  %s361_s0, 256, %s14_s7, [#allocation4], %s287_s16, %s287_s16, %s288_s17  }
  0x12   :  { %278 = dma.done.wait [#allocation4], 256  }
  0x13   :  { %279 = vsyncadd [#allocation4], 4294967040  ;;  %s316_s20 = smov 0  }
  0x14 LB: > { %vm182_vm0 = vcmask 517120   ;;  %s216_s21 = sshll.u32 %s284_s20, 3  ;;  %v289_v1 = vmov 0.0   ;;  %vm100_vm1 = vcmask 31744   ;;  %vm185_vm2 = vcmask 519168   ;;  %s28_s20 = sadd.s32 1, %s284_s20   ;;  %s284_s20 = sphi %s316_s20, %s28_s20  }
  0x15   : > { %s31_s22 = scalar_lea.vmem [#allocation3], %s216_s21  ;;  %s322_s23 = scalar_lea.vmem [#allocation6], %s216_s21 }
  0x16   : > { %v32_v0 = vld [vmem:[%s31_s22] sm:$0xff]  ;;  %183 = vst.msk [vmem:[%s322_s23] sm:$0x3] %vm182_vm0, %v289_v1  ;;  %184 = vst.msk [vmem:[%s322_s23 + $0x6] sm:$0x3] %vm182_vm0, %v289_v1  ;;  %p25_p8 = scmp.ge.s32.totalorder %s28_s20, 2  }
  0x17   : > { %36 = vxpose.xlu0.b32.start.end [1/1] (short) %v32_v0, 128  ;;  %v34_v2 = vcombine.high %v32_v0, %v32_v0  ;;  %s290_s0 = smov (%p25_p8), [#allocation6]  }
  0x18   :  { %s192_s24 = sshll.u32 (%p25_p8), %s290_s0, 4  ;;  %s193_s24 = int_to_ptr.vmem [resolvable:$true] %s192_s24 }
  0x19   :  { %s252_s25 = scalar_lea.vmem (%p25_p8), %s193_s24, 256  ;;  %p257_p10 = scmp.lt.s32.totalorder (%p25_p8), %s193_s24, %s193_s24 }
  0x1a   :  { %p253_p9 = scmp.ne.s32.totalorder (%p25_p8), %s193_s24, %s252_s25  ;;  %p258_p11 = scmp.lt.s32.totalorder (%p25_p8), %s252_s25, %s252_s25 }
  0x1c   :  { %p259_p12 = por (%p25_p8), %p258_p11, %p257_p10 }
  0x1e   :  { %p260_p13 = pnand (%p25_p8), %p259_p12, %p253_p9 }
  0x54   : > { %68 = vxpose.xlu0.b32.start.end [1/1] (short) %v34_v2, 128 }
  0x97   : > { %v52_v3 = vpop.trf.xlu0 }
  0x98   : > { %101 = vst.msk [vmem:[#allocation2] sm:$0xff] %vm100_vm1, %v52_v3 }
  0x9b   : > { %v53_v4 = vpop.trf.xlu0 }
  0x9c   : > { %102 = vst.msk [vmem:[#allocation2 + $0x8] sm:$0xff] %vm100_vm1, %v53_v4 }
  0x9f   : > { %v54_v5 = vpop.trf.xlu0 }
  0xa3   : > { %v55_v6 = vpop.trf.xlu0  ;;  %v133_v7 = vld [vmem:[#allocation2] ss:$2 sm:$0xff] }
  0xa4   : > { %148 = vxpose.xlu1.b32.start [1/8] (short) (narrow) %v133_v7, 8 }
  0xa7   : > { %v56_v8 = vpop.trf.xlu0 }
  0xa8   : > { %105 = vst.msk [vmem:[#allocation2 + $0x20] sm:$0xff] %vm100_vm1, %v56_v8 }
  0xab   : > { %v57_v9 = vpop.trf.xlu0 }
  0xac   : > { %106 = vst.msk [vmem:[#allocation2 + $0x28] sm:$0xff] %vm100_vm1, %v57_v9 }
  0xaf   : > { %v58_v10 = vpop.trf.xlu0 }
  0xb3   : > { %v59_v11 = vpop.trf.xlu0  ;;  %v135_v12 = vld [vmem:[#allocation2 + $0x20] ss:$2 sm:$0xff] }
  0xb4   : > { %149 = vxpose.xlu1.b32.cont [2/8] (short) (narrow) %v135_v12, 8 }
  0xb7   : > { %v60_v13 = vpop.trf.xlu0 }
  0xb8   : > { %109 = vst.msk [vmem:[#allocation2 + $0x40] sm:$0xff] %vm100_vm1, %v60_v13 }
  0xbb   : > { %v61_v14 = vpop.trf.xlu0 }
  0xbc   : > { %110 = vst.msk [vmem:[#allocation2 + $0x48] sm:$0xff] %vm100_vm1, %v61_v14 }
  0xbf   : > { %v62_v15 = vpop.trf.xlu0 }
  0xc3   : > { %v63_v16 = vpop.trf.xlu0  ;;  %v137_v17 = vld [vmem:[#allocation2 + $0x40] ss:$2 sm:$0xff] }
  0xc4   : > { %150 = vxpose.xlu1.b32.cont [3/8] (short) (narrow) %v137_v17, 8 }
  0xc7   : > { %v64_v18 = vpop.trf.xlu0 }
  0xc8   : > { %113 = vst.msk [vmem:[#allocation2 + $0x60] sm:$0xff] %vm100_vm1, %v64_v18 }
  0xcb   : > { %v65_v19 = vpop.trf.xlu0 }
  0xcc   : > { %114 = vst.msk [vmem:[#allocation2 + $0x68] sm:$0xff] %vm100_vm1, %v65_v19 }
  0xcf   : > { %v66_v20 = vpop.trf.xlu0 }
  0xd3   : > { %v67_v21 = vpop.trf.xlu0  ;;  %v139_v22 = vld [vmem:[#allocation2 + $0x60] ss:$2 sm:$0xff] }
  0xd4   : > { %151 = vxpose.xlu1.b32.cont [4/8] (short) (narrow) %v139_v22, 8 }
  0xd7   : > { %v84_v23 = vpop.trf.xlu0 }
  0xd8   : > { %117 = vst.msk [vmem:[#allocation2 + $0x80] sm:$0xff] %vm100_vm1, %v84_v23 }
  0xdb   : > { %v85_v24 = vpop.trf.xlu0 }
  0xdc   : > { %118 = vst.msk [vmem:[#allocation2 + $0x88] sm:$0xff] %vm100_vm1, %v85_v24 }
  0xdf   : > { %v86_v25 = vpop.trf.xlu0 }
  0xe3   : > { %v87_v26 = vpop.trf.xlu0  ;;  %v141_v27 = vld [vmem:[#allocation2 + $0x80] ss:$2 sm:$0xff] }
  0xe4   : > { %152 = vxpose.xlu1.b32.cont [5/8] (short) (narrow) %v141_v27, 8 }
  0xe7   : > { %v88_v28 = vpop.trf.xlu0 }
  0xe8   : > { %121 = vst.msk [vmem:[#allocation2 + $0xa0] sm:$0xff] %vm100_vm1, %v88_v28 }
  0xeb   : > { %v89_v29 = vpop.trf.xlu0 }
  0xec   : > { %122 = vst.msk [vmem:[#allocation2 + $0xa8] sm:$0xff] %vm100_vm1, %v89_v29 }
  0xef   : > { %v90_v30 = vpop.trf.xlu0 }
  0xf3   : > { %v91_v31 = vpop.trf.xlu0  ;;  %v143_v32 = vld [vmem:[#allocation2 + $0xa0] ss:$2 sm:$0xff] }
  0xf4   : > { %153 = vxpose.xlu1.b32.cont [6/8] (short) (narrow) %v143_v32, 8 }
  0xf7   : > { %v92_v33 = vpop.trf.xlu0 }
  0xf8   : > { %125 = vst.msk [vmem:[#allocation2 + $0xc0] sm:$0xff] %vm100_vm1, %v92_v33 }
  0xfb   : > { %v93_v34 = vpop.trf.xlu0 }
  0xfc   : > { %126 = vst.msk [vmem:[#allocation2 + $0xc8] sm:$0xff] %vm100_vm1, %v93_v34 }
  0xff   : > { %v94_v35 = vpop.trf.xlu0 }
 0x103   : > { %v95_v36 = vpop.trf.xlu0  ;;  %v145_v37 = vld [vmem:[#allocation2 + $0xc0] ss:$2 sm:$0xff] }
 0x104   : > { %154 = vxpose.xlu1.b32.cont [7/8] (short) (narrow) %v145_v37, 8 }
 0x107   : > { %v96_v38 = vpop.trf.xlu0 }
 0x108   : > { %129 = vst.msk [vmem:[#allocation2 + $0xe0] sm:$0xff] %vm100_vm1, %v96_v38 }
 0x10b   : > { %v97_v39 = vpop.trf.xlu0 }
 0x10c   : > { %130 = vst.msk [vmem:[#allocation2 + $0xe8] sm:$0xff] %vm100_vm1, %v97_v39 }
 0x10f   : > { %v98_v40 = vpop.trf.xlu0 }
 0x113   : > { %v147_v41 = vld [vmem:[#allocation2 + $0xe0] ss:$2 sm:$0xff]  ;;  %v99_v42 = vpop.trf.xlu0 }
 0x114   : > { %155 = vxpose.xlu1.b32.end [8/8] (short) (narrow) %v147_v41, 8 }
 0x173   :  { %27 = sbr.rel (!%p25_p8) target bundleno = 20 (0x14), region = 44 }
 0x178   : > { %v164_v43 = vpop.trf.xlu1 }
 0x179   : > { %186 = vst.msk [vmem:[%s322_s23 + $0x2] sm:$0xf] %vm185_vm2, %v164_v43 }
 0x17a   :  { %263 = shalt.err (!%p260_p13)
}
 0x17b   :  { %s264_s28 = scalar_lea.hbm %s362_s1, 256 }
 0x17c   :  { %p265_p0 = scmp.ne.s32.totalorder %s362_s1, %s264_s28  ;;  %p268_p1 = scmp.lt.u32.totalorder %s264_s28, %s362_s1 }
 0x17e   :  { %p270_p2 = pnand %p268_p1, %p265_p0 }
 0x180   :  { %273 = shalt.err (!%p270_p2)
}
 0x181   :  { %198 = dma.vmem_to_hbm [thread:$0]  %s193_s24, 256, %s362_s1, [#allocation5], %s287_s16, %s287_s16, %s288_s17  }
 0x182   :  { %280 = dma.done.wait [#allocation5], 256  }
 0x183   :  { %281 = vsyncadd [#allocation5], 4294967040 }
 0x184   :  { %202 = vsyncpa [#allocation4], 1 }
 0x185   :  { %203 = vsyncpa [#allocation5], 1 }

</bundles_post_ra>
